<compile_context>
chip_gen: v5e
topology: v5e:2x2
jax: 0.10.0
libtpu: 0.0.40
codegen_flags: <defaults>
</compile_context>

<pallas_src>
import functools

import jax
import jax.numpy as jnp
from jax import lax
from jax.experimental import pallas as pl
from jax.experimental.pallas import tpu as pltpu


def _mse_kernel(s_ref, t_ref, out_ref, acc_ref, *, inv_total, tile_rows,
                rows_total, needs_mask):
    i = pl.program_id(0)
    nsteps = pl.num_programs(0)

    # Zero the resident (tile_rows, 1) accumulator on the first grid step.
    @pl.when(i == 0)
    def _():
        acc_ref[...] = jnp.zeros_like(acc_ref)

    def _accumulate(mask_rows):
        # Upcast in-kernel so bf16 inputs stay narrow over HBM.
        d = s_ref[...].astype(jnp.float32) - t_ref[...].astype(jnp.float32)
        if mask_rows:
            # Zero the difference (before squaring) for padded tail rows.
            row_ids = lax.broadcasted_iota(jnp.int32, d.shape, 0)
            valid = (i * tile_rows + row_ids) < rows_total
            d = jnp.where(valid, d, 0.0)
        # Per-step lane reduce (XLU) onto the tiny accumulator: no full-block
        # VMEM read-modify-write in the steady state.
        acc_ref[...] += jnp.sum(d * d, axis=-1, keepdims=True)

    if needs_mask:
        # Unmasked common path; masked path only on the final (tail) step.
        @pl.when(i < nsteps - 1)
        def _():
            _accumulate(False)

        @pl.when(i == nsteps - 1)
        def _():
            _accumulate(True)
    else:
        _accumulate(False)

    # Epilogue: one small sublane reduction + constant scale.
    @pl.when(i == nsteps - 1)
    def _():
        total = jnp.sum(acc_ref[...], axis=0, keepdims=True)   # (1, 1)
        out_ref[...] = total * inv_total


def _default_block_bytes():
    """~4 MiB per input block on v7x (faster HBM), 2 MiB on v5e/v6e."""
    try:
        kind = jax.devices()[0].device_kind.lower()
    except Exception:
        kind = ""
    return (4 << 20) if "v7" in kind else (2 << 20)


def _sublane_multiple(*dtypes):
    """Sublane packing granularity: f32 -> 8, bf16 -> 16, int8/fp8 -> 32."""
    min_itemsize = min(jnp.dtype(d).itemsize for d in dtypes)
    return max(8, 32 // max(1, min_itemsize))


def _lane_dense_view(s, t):
    """Reshape to a lane-dense (rows, L) view when C isn't 128-aligned."""
    B, C = s.shape
    if C % 128 == 0:
        return s, t, B, C                       # already lane dense; keep layout
    n = B * C
    if n % 128 == 0:
        for lanes in (512, 384, 256, 128):
            if n % lanes == 0:
                rows = n // lanes
                return s.reshape(rows, lanes), t.reshape(rows, lanes), rows, lanes
    # Odd small shapes: accept lane padding (full-array single-dim blocks).
    return s, t, B, C


def _choose_tile_rows(rows, cols, itemsize, sub, target_bytes):
    r = target_bytes // max(1, cols * itemsize)
    if r >= rows:
        return rows                             # single block covers everything
    r = max(sub, (r // sub) * sub)
    return min(r, rows)


def mse_loss_pallas(out_s: jax.Array, out_t: jax.Array, tile_rows=None) -> jax.Array:
    """MSE loss (mean reduction) computed with a Pallas TPU kernel.

    out_s, out_t: (B, C) arrays of the same shape (f32 or bf16; dtypes may
    differ, both are upcast to f32 in-kernel).  Returns a scalar float32.
    """
    assert out_s.shape == out_t.shape, "student/teacher logits must match in shape"
    B, C = out_s.shape
    n_total = B * C
    inv_total = 1.0 / float(n_total)

    s2d, t2d, rows, cols = _lane_dense_view(out_s, out_t)

    itemsize = max(jnp.dtype(out_s.dtype).itemsize, jnp.dtype(out_t.dtype).itemsize)
    sub = _sublane_multiple(out_s.dtype, out_t.dtype)

    if tile_rows is None:
        tile_rows = _choose_tile_rows(rows, cols, itemsize, sub, _default_block_bytes())
    else:
        tile_rows = min(int(tile_rows), rows)
        if tile_rows < rows:
            tile_rows = min(rows, max(sub, (tile_rows // sub) * sub))

    num_tiles = pl.cdiv(rows, tile_rows)
    needs_mask = (rows % tile_rows) != 0

    kernel = functools.partial(
        _mse_kernel,
        inv_total=inv_total,
        tile_rows=tile_rows,
        rows_total=rows,
        needs_mask=needs_mask,
    )

    out = pl.pallas_call(
        kernel,
        out_shape=jax.ShapeDtypeStruct((1, 1), jnp.float32),
        grid=(num_tiles,),
        in_specs=[
            pl.BlockSpec((tile_rows, cols), lambda i: (i, 0)),
            pl.BlockSpec((tile_rows, cols), lambda i: (i, 0)),
        ],
        # Same output block every step -> output resident across the reduction.
        out_specs=pl.BlockSpec((1, 1), lambda i: (0, 0)),
        scratch_shapes=[pltpu.VMEM((tile_rows, 1), jnp.float32)],
        compiler_params=pltpu.CompilerParams(
            dimension_semantics=("arbitrary",),      # reduction axis
            # 2 inputs x 2 pipeline buffers x <=4 MiB + small accumulator fits;
            # 32 MiB is safe on v5e/v6e (128 MiB physical) and v7x (64 MiB).
            vmem_limit_bytes=32 * 1024 * 1024,
        ),
    )(s2d, t2d)
    return out[0, 0]


if __name__ == "__main__":
    key = jax.random.PRNGKey(0)
    keys = jax.random.split(key, 10)

    def ref_mse(a, b):
        return jnp.mean((a.astype(jnp.float32) - b.astype(jnp.float32)) ** 2)

    # --- Test 1: small f32 logits, auto tile (single block, no mask). ---
    s = jax.random.normal(keys[0], (16, 128), dtype=jnp.float32)
    t = jax.random.normal(keys[1], (16, 128), dtype=jnp.float32)
    loss = jax.block_until_ready(mse_loss_pallas(s, t))
    assert jnp.allclose(loss, ref_mse(s, t), rtol=1e-5, atol=1e-6), (loss, ref_mse(s, t))

    # --- Test 2: non-divisible batch (multi-step grid + masked tail step). ---
    s2 = jax.random.normal(keys[2], (20, 128), dtype=jnp.float32)
    t2 = jax.random.normal(keys[3], (20, 128), dtype=jnp.float32)
    loss2 = jax.block_until_ready(mse_loss_pallas(s2, t2, tile_rows=8))
    assert jnp.allclose(loss2, ref_mse(s2, t2), rtol=1e-5, atol=1e-6), (loss2, ref_mse(s2, t2))

    # --- Test 3: C=96 -> lane-dense reshape to (10, 384), multi-step + tail. ---
    s3 = jax.random.normal(keys[4], (40, 96), dtype=jnp.float32)
    t3 = jax.random.normal(keys[5], (40, 96), dtype=jnp.float32)
    loss3 = jax.block_until_ready(mse_loss_pallas(s3, t3, tile_rows=8))
    assert jnp.allclose(loss3, ref_mse(s3, t3), rtol=1e-5, atol=1e-6), (loss3, ref_mse(s3, t3))

    # --- Test 4: bf16 logits kept in bf16 over HBM, sublane-16 tiling + tail. ---
    s4 = jax.random.normal(keys[6], (40, 128), dtype=jnp.float32).astype(jnp.bfloat16)
    t4 = jax.random.normal(keys[7], (40, 128), dtype=jnp.float32).astype(jnp.bfloat16)
    loss4 = jax.block_until_ready(mse_loss_pallas(s4, t4, tile_rows=16))
    assert jnp.allclose(loss4, ref_mse(s4, t4), rtol=1e-5, atol=1e-6), (loss4, ref_mse(s4, t4))

    # --- Test 5: odd tiny shape (no 128-divisible flattening; single block). ---
    s5 = jax.random.normal(keys[8], (7, 10), dtype=jnp.float32)
    t5 = jax.random.normal(keys[9], (7, 10), dtype=jnp.float32)
    loss5 = jax.block_until_ready(mse_loss_pallas(s5, t5))
    assert jnp.allclose(loss5, ref_mse(s5, t5), rtol=1e-5, atol=1e-6), (loss5, ref_mse(s5, t5))

    print("KERNEL_OK")
</pallas_src>

<mosaic_0001>
module attributes {stable_mosaic.version = 11 : i64} {
  func.func @_mse_kernel(%arg0: i32, %arg1: memref<16x128xf32, #tpu.memory_space<vmem>>, %arg2: memref<16x128xf32, #tpu.memory_space<vmem>>, %arg3: memref<1x1xf32, #tpu.memory_space<vmem>>, %arg4: memref<16x1xf32, #tpu.memory_space<vmem>>) attributes {dimension_semantics = [#tpu.dimension_semantics<arbitrary>], iteration_bounds = array<i64: 1>, scalar_prefetch = 0 : i64, scratch_operands = 1 : i64, tpu.core_type = #tpu.core_type<tc>, window_params = [{transform_indices = @transform_0, window_bounds = array<i64: 16, 128>}, {transform_indices = @transform_1, window_bounds = array<i64: 16, 128>}, {pipeline_mode = #tpu.pipeline_mode<synchronous>, transform_indices = @transform_2, window_bounds = array<i64: 1, 1>}]} {
    %c0_i32 = arith.constant 0 : i32
    %0 = arith.cmpi eq, %arg0, %c0_i32 : i32
    %1 = arith.extui %0 : i1 to i32
    %c0_i32_0 = arith.constant 0 : i32
    %2 = arith.cmpi ne, %1, %c0_i32_0 : i32
    scf.if %2 {
      %cst_10 = arith.constant 0.000000e+00 : f32
      %15 = vector.broadcast %cst_10 : f32 to vector<16x1xf32>
      %c0_11 = arith.constant 0 : index
      %c0_12 = arith.constant 0 : index
      %16 = vector.load %arg4[%c0_11, %c0_12] : memref<16x1xf32, #tpu.memory_space<vmem>>, vector<16x1xf32>
      tpu.vector_store %arg4[%c0_11, %c0_12], %15 {strides = array<i32>} : memref<16x1xf32, #tpu.memory_space<vmem>>, vector<16x1xf32>,
    } else {
    }
    %c0 = arith.constant 0 : index
    %c0_1 = arith.constant 0 : index
    %3 = vector.load %arg1[%c0, %c0_1] : memref<16x128xf32, #tpu.memory_space<vmem>>, vector<16x128xf32>
    %c0_2 = arith.constant 0 : index
    %c0_3 = arith.constant 0 : index
    %4 = vector.load %arg2[%c0_2, %c0_3] : memref<16x128xf32, #tpu.memory_space<vmem>>, vector<16x128xf32>
    %5 = arith.subf %3, %4 : vector<16x128xf32>
    %c0_4 = arith.constant 0 : index
    %c0_5 = arith.constant 0 : index
    %6 = vector.load %arg4[%c0_4, %c0_5] : memref<16x1xf32, #tpu.memory_space<vmem>>, vector<16x1xf32>
    %7 = arith.mulf %5, %5 : vector<16x128xf32>
    %cst = arith.constant dense<0.000000e+00> : vector<16xf32>
    %8 = vector.multi_reduction <add>, %7, %cst [1] : vector<16x128xf32> to vector<16xf32>
    %9 = vector.shape_cast %8 : vector<16xf32> to vector<16x1xf32>
    %10 = arith.addf %6, %9 : vector<16x1xf32>
    %c0_6 = arith.constant 0 : index
    %c0_7 = arith.constant 0 : index
    %11 = vector.load %arg4[%c0_6, %c0_7] : memref<16x1xf32, #tpu.memory_space<vmem>>, vector<16x1xf32>
    tpu.vector_store %arg4[%c0_6, %c0_7], %10 {strides = array<i32>} : memref<16x1xf32, #tpu.memory_space<vmem>>, vector<16x1xf32>,
    %c0_i32_8 = arith.constant 0 : i32
    %12 = arith.cmpi eq, %arg0, %c0_i32_8 : i32
    %13 = arith.extui %12 : i1 to i32
    %c0_i32_9 = arith.constant 0 : i32
    %14 = arith.cmpi ne, %13, %c0_i32_9 : i32
    scf.if %14 {
      %c0_10 = arith.constant 0 : index
      %c0_11 = arith.constant 0 : index
      %15 = vector.load %arg4[%c0_10, %c0_11] : memref<16x1xf32, #tpu.memory_space<vmem>>, vector<16x1xf32>
      %cst_12 = arith.constant dense<0.000000e+00> : vector<1xf32>
      %16 = vector.multi_reduction <add>, %15, %cst_12 [0] : vector<16x1xf32> to vector<1xf32>
      %17 = vector.shape_cast %16 : vector<1xf32> to vector<1x1xf32>
      %cst_13 = arith.constant 4.8828125E-4 : f32
      %18 = vector.broadcast %cst_13 : f32 to vector<1x1xf32>
      %19 = arith.mulf %17, %18 : vector<1x1xf32>
      %c0_14 = arith.constant 0 : index
      %c0_15 = arith.constant 0 : index
      %20 = vector.load %arg3[%c0_14, %c0_15] : memref<1x1xf32, #tpu.memory_space<vmem>>, vector<1x1xf32>
      tpu.vector_store %arg3[%c0_14, %c0_15], %19 {strides = array<i32>} : memref<1x1xf32, #tpu.memory_space<vmem>>, vector<1x1xf32>,
    } else {
    }
    return
  }
  func.func @transform_0(%arg0: i32) -> (i32, i32) {
    %c0_i32 = arith.constant 0 : i32
    %c0_i32_0 = arith.constant 0 : i32
    return %arg0, %c0_i32 : i32, i32
  }
  func.func @transform_1(%arg0: i32) -> (i32, i32) {
    %c0_i32 = arith.constant 0 : i32
    %c0_i32_0 = arith.constant 0 : i32
    return %arg0, %c0_i32 : i32, i32
  }
  func.func @transform_2(%arg0: i32) -> (i32, i32) {
    %c0_i32 = arith.constant 0 : i32
    %c0_i32_0 = arith.constant 0 : i32
    %c0_i32_1 = arith.constant 0 : i32
    return %c0_i32, %c0_i32_0 : i32, i32
  }
}

</mosaic_0001>

<bundles_post_ra>
// kernel: tpu_custom_call.1
= control target key start
LH: loop header
LB: loop body
LE: loop exit
PB: predicated region body
PF: predicated region fallthrough
CT: control target
= control target key end

     0   :  { %7 = vsyncpa [#allocation4], 0  ;;  %s225_s0 = inlined_call_operand.hbm [shape: f32[16,128], index: 0, kind: input, shape index: {}]   ;;  %s226_s1 = inlined_call_operand.hbm [shape: f32[16,128], index: 1, kind: input, shape index: {}]   ;;  %s227_s2 = inlined_call_operand.hbm [shape: f32[1,1], index: 2, kind: output, shape index: {}]  }
   0x1   :  { %8 = vsyncpa [#allocation7], 0 }
   0x2   :  { %9 = vsyncpa [#allocation5], 0  ;;  %s14_s11 = sshll.u32 %s225_s0, 4  ;;  %s189_s12 = smov [#allocation3]   ;;  %s15_s11 = int_to_ptr.hbm [resolvable:$true] %s14_s11 }
   0x3   :  { %s16_s13 = sshll.u32 %s189_s12, 4  ;;  %s27_s16 = sshll.u32 %s226_s1, 4  ;;  %s17_s13 = int_to_ptr.vmem [resolvable:$true] %s16_s13  ;;  %s28_s16 = int_to_ptr.hbm [resolvable:$true] %s27_s16 }
   0x4   :  { %s190_s17 = smov 128   ;;  %s191_s18 = smov 8  }
   0x5   :  { %22 = dma.hbm_to_vmem [thread:$0]  %s15_s11, 256, %s17_s13, [#allocation4], %s190_s17, %s190_s17, %s191_s18  }
   0x6   :  { %s192_s19 = smov [#allocation6]  }
   0x7   :  { %s29_s20 = sshll.u32 %s192_s19, 4  ;;  %s30_s20 = int_to_ptr.vmem [resolvable:$true] %s29_s20 }
   0x8   :  { %35 = dma.hbm_to_vmem [thread:$0]  %s28_s16, 256, %s30_s20, [#allocation7], %s190_s17, %s190_s17, %s191_s18  }
   0x9   :  { %183 = dma.done.wait [#allocation4], 256  }
   0xa   :  { %184 = vsyncadd [#allocation4], 4294967040 }
   0xb   :  { %185 = dma.done.wait [#allocation7], 256  }
   0xc   :  { %186 = vsyncadd [#allocation7], 4294967040  ;;  %vm48_vm0 = vcmask 7168   ;;  %v193_v0 = vmov 0.0   ;;  %v51_v1 = vld [vmem:[#allocation3] sm:$0xff]  ;;  %v53_v2 = vld [vmem:[#allocation6] sm:$0xff] }
   0xd   :  { %49 = vst.msk [vmem:[#allocation2] sm:$0xff] %vm48_vm0, %v193_v0  ;;  %v55_v3 = vsub.f32 %v51_v1, %v53_v2  ;;  %v52_v4 = vld [vmem:[#allocation3 + $0x8] sm:$0xff]  ;;  %v54_v5 = vld [vmem:[#allocation6 + $0x8] sm:$0xff]  ;;  %s194_s0 = smov [#allocation8]   ;;  %s94_s23 = sshll.u32 %s227_s2, 4  ;;  %vm85_vm1 = vcmask 0   ;;  %s95_s23 = int_to_ptr.hbm [resolvable:$true] %s94_s23 }
   0xe   :  { %50 = vst.msk [vmem:[#allocation2 + $0x8] sm:$0xff] %vm48_vm0, %v193_v0  ;;  %v56_v7 = vsub.f32 %v52_v4, %v54_v5  ;;  %s92_s1 = sshll.u32 %s194_s0, 4  ;;  %s93_s1 = int_to_ptr.vmem [resolvable:$true] %s92_s1 }
   0xf   :  { %v59_v6 = vmul.f32 %v55_v3, %v55_v3 }
  0x10   :  { %v60_v8 = vmul.f32 %v56_v7, %v56_v7 }
  0x11   :  { %61 = vadd.xlane.f32.xlu0 %v59_v6 }
  0x14   :  { %v57_v9 = vld [vmem:[#allocation2] sm:$0xff] }
  0x15   :  { %v58_v12 = vld [vmem:[#allocation2 + $0x8] sm:$0xff] }
  0x19   :  { %63 = vadd.xlane.f32.xlu0 %v60_v8 }
  0x84   :  { %v62_v10 = vpop.xlane.xlu0 %61 }
  0x85   :  { %v65_v11 = vadd.f32 %v62_v10, %v57_v9 }
  0x87   :  { %68 = vst.msk [vmem:[#allocation2] sm:$0xff] %vm48_vm0, %v65_v11 }
  0x8c   :  { %v64_v13 = vpop.xlane.xlu0 %63 }
  0x8d   :  { %v66_v14 = vadd.f32 %v64_v13, %v58_v12 }
  0x8e   :  { %v73_v15 = vld [vmem:[#allocation2] sm:$0xff] }
  0x8f   :  { %69 = vst.msk [vmem:[#allocation2 + $0x8] sm:$0xff] %vm48_vm0, %v66_v14  ;;  %v75_v17 = vsel %vm48_vm0, %v73_v15, 0.0 }
  0x96   :  { %v74_v16 = vld [vmem:[#allocation2 + $0x8] sm:$0xff] }
  0x97   :  { %v76_v18 = vsel %vm48_vm0, %v74_v16, 0.0 }
  0x98   :  { %v77_v19 = vadd.f32 %v76_v18, %v75_v17 }
  0x9a   :  { %v78_v20 = vrot.slane %v77_v19, 4 }
  0x9c   :  { %v79_v21 = vadd.f32 %v78_v20, %v77_v19 }
  0x9e   :  { %v80_v22 = vrot.slane %v79_v21, 2 }
  0xa0   :  { %v81_v23 = vadd.f32 %v80_v22, %v79_v21 }
  0xa2   :  { %v82_v24 = vrot.slane %v81_v23, 1 }
  0xa4   :  { %v83_v25 = vadd.f32 %v82_v24, %v81_v23 }
  0xa6   :  { %v84_v26 = vmul.f32 0.00048828125, %v83_v25 }
  0xa8   :  { %86 = vst.msk [vmem:[#allocation8] sm:$0x1] %vm85_vm1, %v84_v26 }
  0xa9   :  { %97 = dma.vmem_to_hbm [thread:$0]  %s93_s1, 16, %s95_s23, [#allocation5]  }
  0xaa   :  { %187 = dma.done.wait [#allocation5], 16  }
  0xab   :  { %188 = vsyncadd [#allocation5], 4294967280 }
  0xac   :  { %102 = vsyncpa [#allocation4], 1 }
  0xad   :  { %103 = vsyncpa [#allocation7], 1 }
  0xae   :  { %104 = vsyncpa [#allocation5], 1 }

</bundles_post_ra>
